<compile_context>
chip_gen: v7x
topology: tpu7x:2x2x1
jax: 0.10.0
libtpu: 0.0.40
codegen_flags: <defaults>
</compile_context>

<pallas_src>
import jax
import jax.numpy as jnp
from jax.experimental import pallas as pl
from jax.experimental.pallas import tpu as pltpu


def _fused_kernel(p_ref, xT_ref, oT_ref):
    # p_ref : (8, 4)  f32   cols 0..2 = Wc^T (8,3), col 3 = fused bias (8,1)
    # xT_ref: (3, tb)       batch tile, batch on the lane axis (lane-dense)
    # oT_ref: (8, tb)       rows 0..3 = head1, rows 4..7 = head2 (lane-dense)
    p = p_ref[...]
    x = xT_ref[...].astype(jnp.float32)
    # Three VPU broadcast-FMAs: (8,1) weight column  x  (1,tb) batch row.
    acc = p[:, 3:4]                      # fused bias, lane-broadcast
    acc = acc + p[:, 0:1] * x[0:1, :]
    acc = acc + p[:, 1:2] * x[1:2, :]
    acc = acc + p[:, 2:3] * x[2:3, :]
    oT_ref[...] = acc.astype(oT_ref.dtype)


def _round_up(n, m):
    return ((n + m - 1) // m) * m


def _pack_params(params):
    """Fuse trunk + both heads into one (8, 4) block: [Wc^T | bc]."""
    f32 = jnp.float32
    w1 = params["w_linear"].astype(f32)                       # (2, 3)
    b1 = params["b_linear"].astype(f32)                       # (2,)
    wh = jnp.concatenate([params["w_head1"].astype(f32),
                          params["w_head2"].astype(f32)], axis=0)    # (8, 2)
    bh = jnp.concatenate([params["b_head1"].astype(f32),
                          params["b_head2"].astype(f32)])            # (8,)
    wcT = wh @ w1                                              # (8, 3)
    bc = wh @ b1 + bh                                          # (8,)
    return jnp.concatenate([wcT, bc[:, None]], axis=1)         # (8, 4)


def _pick_tile(batch, tb_max):
    """Lane-tile size and grid length.

    * batch < 256: one full-extent block (lane dim == array dim is legal even
      when it is not a multiple of 128).
    * otherwise: lane tile is a multiple of 128, capped at tb_max, and sized so
      the grid has >= 2 steps (v7x megacore sharding); the ragged tail block is
      handled by Pallas (padded read / masked write), no host-side padding.
    """
    if batch < 256:
        return batch, 1
    tb = min(tb_max, _round_up(pl.cdiv(batch, 2), 128))
    return tb, pl.cdiv(batch, tb)


def multihead_forward_fused(xT, params, tb_max=32768):
    """Performance entry point.

    xT: (3, B) lane-dense input slab.
    Returns the (8, B) lane-dense output slab: rows 0..3 = head1, 4..7 = head2.
    """
    B = xT.shape[1]
    packed = _pack_params(params)                              # (8, 4) f32
    tb, nsteps = _pick_tile(B, tb_max)

    return pl.pallas_call(
        _fused_kernel,
        out_shape=jax.ShapeDtypeStruct((8, B), xT.dtype),
        grid=(nsteps,),
        in_specs=[
            pl.BlockSpec((8, 4), lambda i: (0, 0)),            # params, resident
            pl.BlockSpec((3, tb), lambda i: (0, i)),           # batch tile of x^T
        ],
        out_specs=pl.BlockSpec((8, tb), lambda i: (0, i)),
        compiler_params=pltpu.CompilerParams(
            dimension_semantics=("parallel",)),
    )(packed, xT)


def multihead_forward(x, params, tb_max=32768):
    """Module-compatible API matching MultiHeadTestNet.forward.

    x: (B, 3).  params: PyTorch-convention shapes
       w_linear (2,3), b_linear (2,), w_head1 (4,2), b_head1 (4,),
       w_head2 (4,2), b_head2 (4,).
    Returns (o1, o2), each (B, 4).

    The transpose of x and the head split / re-transpose below are wrapper-side
    layout plumbing, not kernel work; latency-critical callers should feed /
    consume the lane-dense slabs via multihead_forward_fused directly.
    """
    xT = x.T                                                   # (3, B)
    outT = multihead_forward_fused(xT, params, tb_max=tb_max)  # (8, B)
    # Split along the leading (sublane) axis where the halves are contiguous.
    return outT[:4].T, outT[4:].T


def init_params(key):
    """Deterministic init matching PyTorch nn.Linear default U(-1/sqrt(fan_in), +)."""
    k = jax.random.split(key, 6)

    def lin_init(kw, kb, out_f, in_f):
        bound = 1.0 / jnp.sqrt(in_f)
        w = jax.random.uniform(kw, (out_f, in_f), jnp.float32, -bound, bound)
        b = jax.random.uniform(kb, (out_f,), jnp.float32, -bound, bound)
        return w, b

    w_lin, b_lin = lin_init(k[0], k[1], 2, 3)
    w_h1, b_h1 = lin_init(k[2], k[3], 4, 2)
    w_h2, b_h2 = lin_init(k[4], k[5], 4, 2)
    return {"w_linear": w_lin, "b_linear": b_lin,
            "w_head1": w_h1, "b_head1": b_h1,
            "w_head2": w_h2, "b_head2": b_h2}


def reference_forward(x, p):
    feat = x @ p["w_linear"].T + p["b_linear"]
    return (feat @ p["w_head1"].T + p["b_head1"],
            feat @ p["w_head2"].T + p["b_head2"])


if __name__ == "__main__":
    key = jax.random.PRNGKey(0)
    kx, kp = jax.random.split(key)

    # Small shape consistent with the module: batch=8, in_features=3.
    B = 8
    x = jax.random.normal(kx, (B, 3), jnp.float32)
    params = init_params(kp)

    o1, o2 = multihead_forward(x, params)
    jax.block_until_ready((o1, o2))

    r1, r2 = reference_forward(x, params)
    assert o1.shape == (B, 4) and o2.shape == (B, 4)
    assert jnp.allclose(o1, r1, atol=1e-5, rtol=1e-5)
    assert jnp.allclose(o2, r2, atol=1e-5, rtol=1e-5)

    # Ragged multi-tile batch: exercises the 2-step grid (megacore) and the
    # Pallas-handled partial last block (no host-side padding).
    B2 = 1000
    x2 = jax.random.normal(jax.random.PRNGKey(1), (B2, 3), jnp.float32)
    p1, p2 = multihead_forward(x2, params)
    jax.block_until_ready((p1, p2))
    q1, q2 = reference_forward(x2, params)
    assert jnp.allclose(p1, q1, atol=1e-5, rtol=1e-5)
    assert jnp.allclose(p2, q2, atol=1e-5, rtol=1e-5)

    print("KERNEL_OK")
</pallas_src>

<mosaic_0001>
module attributes {stable_mosaic.version = 11 : i64} {
  func.func @_fused_kernel(%arg0: i32, %arg1: memref<8x4xf32, #tpu.memory_space<vmem>>, %arg2: memref<3x8xf32, #tpu.memory_space<vmem>>, %arg3: memref<8x8xf32, #tpu.memory_space<vmem>>) attributes {dimension_semantics = [#tpu.dimension_semantics<parallel>], iteration_bounds = array<i64: 1>, scalar_prefetch = 0 : i64, scratch_operands = 0 : i64, tpu.core_type = #tpu.core_type<tc>, window_params = [{pipeline_mode = #tpu.pipeline_mode<synchronous>, transform_indices = @transform_0, window_bounds = array<i64: 8, 4>}, {transform_indices = @transform_1, window_bounds = array<i64: 3, 8>}, {transform_indices = @transform_2, window_bounds = array<i64: 8, 8>}]} {
    %c0 = arith.constant 0 : index
    %c0_0 = arith.constant 0 : index
    %0 = vector.load %arg1[%c0, %c0_0] : memref<8x4xf32, #tpu.memory_space<vmem>>, vector<8x4xf32>
    %c0_1 = arith.constant 0 : index
    %c0_2 = arith.constant 0 : index
    %1 = vector.load %arg2[%c0_1, %c0_2] : memref<3x8xf32, #tpu.memory_space<vmem>>, vector<3x8xf32>
    %2 = vector.extract_strided_slice %0 {offsets = [0, 3], sizes = [8, 1], strides = [1, 1]} : vector<8x4xf32> to vector<8x1xf32>
    %3 = vector.extract_strided_slice %0 {offsets = [0, 0], sizes = [8, 1], strides = [1, 1]} : vector<8x4xf32> to vector<8x1xf32>
    %4 = vector.extract_strided_slice %1 {offsets = [0, 0], sizes = [1, 8], strides = [1, 1]} : vector<3x8xf32> to vector<1x8xf32>
    %5 = vector.broadcast %3 : vector<8x1xf32> to vector<8x8xf32>
    %6 = vector.broadcast %4 : vector<1x8xf32> to vector<8x8xf32>
    %7 = arith.mulf %5, %6 : vector<8x8xf32>
    %8 = vector.broadcast %2 : vector<8x1xf32> to vector<8x8xf32>
    %9 = arith.addf %8, %7 : vector<8x8xf32>
    %10 = vector.extract_strided_slice %0 {offsets = [0, 1], sizes = [8, 1], strides = [1, 1]} : vector<8x4xf32> to vector<8x1xf32>
    %11 = vector.extract_strided_slice %1 {offsets = [1, 0], sizes = [1, 8], strides = [1, 1]} : vector<3x8xf32> to vector<1x8xf32>
    %12 = vector.broadcast %10 : vector<8x1xf32> to vector<8x8xf32>
    %13 = vector.broadcast %11 : vector<1x8xf32> to vector<8x8xf32>
    %14 = arith.mulf %12, %13 : vector<8x8xf32>
    %15 = arith.addf %9, %14 : vector<8x8xf32>
    %16 = vector.extract_strided_slice %0 {offsets = [0, 2], sizes = [8, 1], strides = [1, 1]} : vector<8x4xf32> to vector<8x1xf32>
    %17 = vector.extract_strided_slice %1 {offsets = [2, 0], sizes = [1, 8], strides = [1, 1]} : vector<3x8xf32> to vector<1x8xf32>
    %18 = vector.broadcast %16 : vector<8x1xf32> to vector<8x8xf32>
    %19 = vector.broadcast %17 : vector<1x8xf32> to vector<8x8xf32>
    %20 = arith.mulf %18, %19 : vector<8x8xf32>
    %21 = arith.addf %15, %20 : vector<8x8xf32>
    %c0_3 = arith.constant 0 : index
    %c0_4 = arith.constant 0 : index
    %22 = vector.load %arg3[%c0_3, %c0_4] : memref<8x8xf32, #tpu.memory_space<vmem>>, vector<8x8xf32>
    tpu.vector_store %arg3[%c0_3, %c0_4], %21 {strides = array<i32>} : memref<8x8xf32, #tpu.memory_space<vmem>>, vector<8x8xf32>,
    return
  }
  func.func @transform_0(%arg0: i32) -> (i32, i32) {
    %c0_i32 = arith.constant 0 : i32
    %c0_i32_0 = arith.constant 0 : i32
    %c0_i32_1 = arith.constant 0 : i32
    return %c0_i32, %c0_i32_0 : i32, i32
  }
  func.func @transform_1(%arg0: i32) -> (i32, i32) {
    %c0_i32 = arith.constant 0 : i32
    %c0_i32_0 = arith.constant 0 : i32
    return %c0_i32, %arg0 : i32, i32
  }
  func.func @transform_2(%arg0: i32) -> (i32, i32) {
    %c0_i32 = arith.constant 0 : i32
    %c0_i32_0 = arith.constant 0 : i32
    return %c0_i32, %arg0 : i32, i32
  }
}

</mosaic_0001>

<bundles_post_ra>
// kernel: tpu_custom_call.1
= control target key start
LH: loop header
LB: loop body
LE: loop exit
PB: predicated region body
PF: predicated region fallthrough
CT: control target
= control target key end

     0   :  { %v99_v1 = vmov 0   ;;  %v100_v2 = vmov 1   ;;  %s137_s0 = inlined_call_operand.vmem [shape: f32[8,4], index: 0, kind: input, shape index: {}]   ;;  %s138_s1 = inlined_call_operand.vmem [shape: f32[3,8], index: 1, kind: input, shape index: {}]   ;;  %s139_s2 = inlined_call_operand.hbm [shape: f32[8,8], index: 2, kind: output, shape index: {}]  }
   0x1   :  { %v12_v0 = vld [vmem:[%s137_s0] sm:$0xff]  ;;  %70 = vset.pattern.permute.xlu0 %v99_v1  ;;  %72 = vset.pattern.permute.xlu1 %v100_v2 }
   0x2   :  { %7 = vsyncpa [#allocation3], 0  ;;  %16 = vperm.xlu0 %70, %v12_v0   ;;  %30 = vperm.xlu1 %72, %v12_v0   ;;  %v101_v3 = vmov 3   ;;  %v102_v4 = vmov 2   ;;  %v19_v5 = vlaneseq  ;;  %v13_v8 = vld [vmem:[%s138_s1] sm:$0x7] }
   0x3   :  { %s103_s0 = smov [#allocation2]   ;;  %vm49_vm0 = vcmask 64512  }
   0x4   :  { %v20_v6 = vshrl.u32 %v19_v5, 7  ;;  %s57_s13 = sshll.u32 %s103_s0, 4  ;;  %s58_s13 = int_to_ptr.vmem [resolvable:$true] %s57_s13 }
   0x5   :  { %s75_s1 = scalar_lea.vmem %s58_s13, 128  ;;  %p80_p1 = scmp.lt.s32.totalorder %s58_s13, %s58_s13 }
   0x6   :  { %71 = vset.pattern.permute.xlu0 %v101_v3  ;;  %73 = vset.pattern.permute.xlu1 %v102_v4  ;;  %v21_v7 = vsub.s32 0, %v20_v6  ;;  %v35_v9 = vsub.s32 1, %v20_v6  ;;  %v45_v10 = vsub.s32 2, %v20_v6  ;;  %p76_p0 = scmp.ne.s32.totalorder %s58_s13, %s75_s1  ;;  %p81_p2 = scmp.lt.s32.totalorder %s75_s1, %s75_s1 }
   0x7   :  { %25 = vperm.xlu0 %71, %v12_v0   ;;  %40 = vperm.xlu1 %73, %v12_v0  }
   0x8   :  { %v22_v11 = vrot.slane %v13_v8, %v21_v7  ;;  %v36_v14 = vrot.slane %v13_v8, %v35_v9  ;;  %v46_v15 = vrot.slane %v13_v8, %v45_v10  ;;  %p82_p3 = por %p81_p2, %p80_p1 }
   0xa   :  { %p83_p4 = pnand %p82_p3, %p76_p0 }
   0xb   :  { %74 = vset.pattern.permute.xlu0 %v102_v4 }
  0x81   :  { %v17_v12 = vpop.permute.xlu0 %16  ;;  %v31_v13 = vpop.permute.xlu1 %30 }
  0x82   :  { %v23_v16 = vmul.f32 %v22_v11, %v17_v12  ;;  %v37_v19 = vmul.f32 %v36_v14, %v31_v13 }
  0x86   :  { %v26_v17 = vpop.permute.xlu0 %25  ;;  %v41_v18 = vpop.permute.xlu1 %40 }
  0x87   :  { %v28_v20 = vadd.f32 %v26_v17, %v23_v16  ;;  %v47_v21 = vmul.f32 %v46_v15, %v41_v18 }
  0x89   :  { %v38_v22 = vadd.f32 %v37_v19, %v28_v20 }
  0x8b   :  { %v48_v23 = vadd.f32 %v47_v21, %v38_v22 }
  0x8d   :  { %50 = vst.msk [vmem:[#allocation2] sm:$0xff] %vm49_vm0, %v48_v23 }
  0x8e   :  { %86 = shalt.err (!%p83_p4)
}
  0x8f   :  { %s87_s16 = scalar_lea.hbm %s139_s2, 128 }
  0x90   :  { %p88_p5 = scmp.ne.s32.totalorder %s139_s2, %s87_s16  ;;  %p91_p6 = scmp.lt.u32.totalorder %s87_s16, %s139_s2 }
  0x92   :  { %p93_p7 = pnand %p91_p6, %p88_p5 }
  0x94   :  { %96 = shalt.err (!%p93_p7)
}
  0x95   :  { %60 = dma.vmem_to_hbm [thread:$0]  %s58_s13, 128, %s139_s2, [#allocation3]  }
  0x96   :  { %97 = dma.done.wait [#allocation3], 128  }
  0x97   :  { %98 = vsyncadd [#allocation3], 4294967168 }
  0x98   :  { %64 = vsyncpa [#allocation3], 1 }

</bundles_post_ra>
